<compile_context>
chip_gen: v6e
topology: v6e:2x2x1
jax: 0.10.0
libtpu: 0.0.40
codegen_flags: <defaults>
</compile_context>

<pallas_src>
import functools

import jax
import jax.numpy as jnp
from jax.experimental import pallas as pl
from jax.experimental.pallas import tpu as pltpu

_LANE = 128       # feature / lane padding granularity
_ROW_TILE = 128   # node-axis tile for the N^2 aggregation matmuls


def _round_up(x, m):
    return ((x + m - 1) // m) * m


def _vmem_limit(est_bytes):
    """2x headroom over the estimated resident set, clamped to [32, 64] MiB."""
    return int(min(64 * 1024 * 1024, max(32 * 1024 * 1024, 2 * est_bytes)))


# ----------------------------- Pallas kernels --------------------------------

def _transform_kernel(h_ref, w_ref, o_ref):
    """o = h_rows @ W   (row-local per-node transform, bf16 out, f32 accum)."""
    o_ref[...] = jnp.dot(h_ref[...], w_ref[...],
                         preferred_element_type=jnp.float32).astype(o_ref.dtype)


def _agg_kernel(a_ref, x_ref, b_ref, o_ref):
    """o = relu(A_rows @ x + b)   (transform-first layers: x = h @ W)."""
    z = jnp.dot(a_ref[...], x_ref[...], preferred_element_type=jnp.float32)
    o_ref[...] = jnp.maximum(z + b_ref[...], 0.0).astype(o_ref.dtype)


def _agg_transform_kernel(a_ref, h_ref, w_ref, b_ref, o_ref):
    """o = relu((A_rows @ h) @ W + b)   (aggregate-first layers)."""
    ah = jnp.dot(a_ref[...], h_ref[...], preferred_element_type=jnp.float32)
    z = jnp.dot(ah.astype(jnp.bfloat16), w_ref[...],
                preferred_element_type=jnp.float32)
    o_ref[...] = jnp.maximum(z + b_ref[...], 0.0).astype(o_ref.dtype)


def _mean_kernel(h_ref, o_ref, *, n_real):
    """Fused dgl.mean_nodes: mean over the *real* node rows only."""
    h = h_ref[...].astype(jnp.float32)
    row = jax.lax.broadcasted_iota(jnp.int32, h.shape, 0)
    h = jnp.where(row < n_real, h, 0.0)   # padded rows carry relu(bias): mask
    o_ref[...] = jnp.sum(h, axis=0, keepdims=True) * (1.0 / n_real)


# --------------------------- pallas_call wrappers -----------------------------

def _transform(h_pad, w_pad):
    """hw = h @ W, row-tiled, both TensorCores ('parallel')."""
    n_pad, f_in_pad = h_pad.shape
    f_out_pad = w_pad.shape[1]
    nb = n_pad // _ROW_TILE
    est = (2 * _ROW_TILE * f_in_pad * 2          # h row tiles (double-buffered)
           + f_in_pad * f_out_pad * 2            # W resident
           + 2 * _ROW_TILE * f_out_pad * 2       # output tiles
           + _ROW_TILE * f_out_pad * 4)          # f32 accumulator
    return pl.pallas_call(
        _transform_kernel,
        out_shape=jax.ShapeDtypeStruct((n_pad, f_out_pad), jnp.bfloat16),
        grid=(nb,),
        in_specs=[pl.BlockSpec((_ROW_TILE, f_in_pad), lambda i: (i, 0)),
                  pl.BlockSpec((f_in_pad, f_out_pad), lambda i: (0, 0))],
        out_specs=pl.BlockSpec((_ROW_TILE, f_out_pad), lambda i: (i, 0)),
        compiler_params=pltpu.CompilerParams(
            dimension_semantics=("parallel",),
            vmem_limit_bytes=_vmem_limit(est)),
    )(h_pad, w_pad)


def _aggregate(a_pad, x_pad, b_pad):
    """h_new = relu(A @ x + b), A streamed as (128, N) row tiles."""
    n_pad = a_pad.shape[0]
    f_out_pad = x_pad.shape[1]
    nb = n_pad // _ROW_TILE
    est = (2 * _ROW_TILE * n_pad * 2             # A row tiles (double-buffered)
           + n_pad * f_out_pad * 2               # x resident
           + f_out_pad * 4                       # bias
           + 2 * _ROW_TILE * f_out_pad * 2       # output tiles
           + _ROW_TILE * f_out_pad * 4)          # f32 accumulator
    return pl.pallas_call(
        _agg_kernel,
        out_shape=jax.ShapeDtypeStruct((n_pad, f_out_pad), jnp.bfloat16),
        grid=(nb,),
        in_specs=[pl.BlockSpec((_ROW_TILE, n_pad), lambda i: (i, 0)),
                  pl.BlockSpec((n_pad, f_out_pad), lambda i: (0, 0)),
                  pl.BlockSpec((1, f_out_pad), lambda i: (0, 0))],
        out_specs=pl.BlockSpec((_ROW_TILE, f_out_pad), lambda i: (i, 0)),
        compiler_params=pltpu.CompilerParams(
            dimension_semantics=("parallel",),
            vmem_limit_bytes=_vmem_limit(est)),
    )(a_pad, x_pad, b_pad)


def _aggregate_transform(a_pad, h_pad, w_pad, b_pad):
    """h_new = relu((A @ h) @ W + b), A streamed as (128, N) row tiles."""
    n_pad = a_pad.shape[0]
    f_in_pad = h_pad.shape[1]
    f_out_pad = w_pad.shape[1]
    nb = n_pad // _ROW_TILE
    est = (2 * _ROW_TILE * n_pad * 2             # A row tiles
           + n_pad * f_in_pad * 2                # h resident
           + f_in_pad * f_out_pad * 2            # W resident
           + f_out_pad * 4                       # bias
           + 2 * _ROW_TILE * f_out_pad * 2       # output tiles
           + _ROW_TILE * (f_in_pad + f_out_pad) * 4)  # f32 temporaries
    return pl.pallas_call(
        _agg_transform_kernel,
        out_shape=jax.ShapeDtypeStruct((n_pad, f_out_pad), jnp.bfloat16),
        grid=(nb,),
        in_specs=[pl.BlockSpec((_ROW_TILE, n_pad), lambda i: (i, 0)),
                  pl.BlockSpec((n_pad, f_in_pad), lambda i: (0, 0)),
                  pl.BlockSpec((f_in_pad, f_out_pad), lambda i: (0, 0)),
                  pl.BlockSpec((1, f_out_pad), lambda i: (0, 0))],
        out_specs=pl.BlockSpec((_ROW_TILE, f_out_pad), lambda i: (i, 0)),
        compiler_params=pltpu.CompilerParams(
            dimension_semantics=("parallel",),
            vmem_limit_bytes=_vmem_limit(est)),
    )(a_pad, h_pad, w_pad, b_pad)


def _mean_nodes(h_pad, n_real):
    """(1, f_pad) mean over real node rows, f32."""
    n_pad, f_pad = h_pad.shape
    est = n_pad * f_pad * 2 + n_pad * f_pad * 4 + f_pad * 4
    vmem = pl.BlockSpec(memory_space=pltpu.MemorySpace.VMEM)
    return pl.pallas_call(
        functools.partial(_mean_kernel, n_real=n_real),
        out_shape=jax.ShapeDtypeStruct((1, f_pad), jnp.float32),
        in_specs=[vmem],
        out_specs=vmem,
        compiler_params=pltpu.CompilerParams(vmem_limit_bytes=_vmem_limit(est)),
    )(h_pad)


# ------------------------------- Forward pass --------------------------------

def deep_dgl_gcn_forward(a_hat, features, weights, biases):
    """relu(A_hat @ h @ W_i + b_i) per layer, then mean over nodes."""
    n = a_hat.shape[0]
    n_pad = _round_up(n, _ROW_TILE)

    # Zero-pad the node axis: padded rows/cols of A are zero, so padded nodes
    # never contribute to real rows.  (Their relu(bias) values are masked in
    # the final mean kernel.)
    a_pad = jnp.zeros((n_pad, n_pad), jnp.bfloat16)
    a_pad = a_pad.at[:n, :n].set(a_hat.astype(jnp.bfloat16))

    # Layer-0 input fed directly as bf16 at its own padded width.
    f_in = features.shape[1]
    f_in_pad = _round_up(f_in, _LANE)
    h = jnp.zeros((n_pad, f_in_pad), jnp.bfloat16)
    h = h.at[:n, :f_in].set(features.astype(jnp.bfloat16))

    for w, b in zip(weights, biases):
        fi, fo = w.shape
        fi_pad = _round_up(fi, _LANE)
        fo_pad = _round_up(fo, _LANE)
        assert h.shape[1] == fi_pad, (h.shape, fi_pad)
        w_pad = jnp.zeros((fi_pad, fo_pad), jnp.bfloat16).at[:fi, :fo].set(
            w.astype(jnp.bfloat16))
        b_pad = jnp.zeros((1, fo_pad), jnp.float32).at[:, :fo].set(
            b.astype(jnp.float32))

        if fo < fi:
            # Transform first: A @ (h @ W) -> N^2 matmul width is fo_pad.
            hw = _transform(h, w_pad)
            h = _aggregate(a_pad, hw, b_pad)
        else:
            # Aggregate first: (A @ h) @ W -> N^2 matmul width is fi_pad.
            h = _aggregate_transform(a_pad, h, w_pad, b_pad)

    out_pad = _mean_nodes(h, n)
    n_classes = weights[-1].shape[1]
    return out_pad[:, :n_classes]   # drop padded lanes -> (1, n_classes)


# --------------------------- Model setup (host) -------------------------------

def init_params(key, in_feats, n_hidden, n_classes, n_layers):
    """Xavier-uniform weights + zero biases (DGL GraphConv default init)."""
    dims = [in_feats] + [n_hidden] * n_layers + [n_classes]
    weights, biases = [], []
    for i in range(len(dims) - 1):
        key, sub = jax.random.split(key)
        fan_in, fan_out = dims[i], dims[i + 1]
        bound = jnp.sqrt(6.0 / (fan_in + fan_out))
        w = jax.random.uniform(sub, (fan_in, fan_out), jnp.float32, -bound, bound)
        b = jnp.zeros((1, fan_out), jnp.float32)
        weights.append(w)
        biases.append(b)
    return weights, biases


def normalized_adjacency(key, n_nodes):
    """Dense symmetric adjacency with self-loops, normalized D^-1/2 A D^-1/2."""
    a = (jax.random.uniform(key, (n_nodes, n_nodes)) < 0.1).astype(jnp.float32)
    a = jnp.maximum(a, a.T)                     # undirected
    a = jnp.maximum(a, jnp.eye(n_nodes))        # self-loops (no 0-degree nodes)
    deg = jnp.sum(a, axis=1)
    d_inv_sqrt = 1.0 / jnp.sqrt(jnp.maximum(deg, 1.0))
    return a * d_inv_sqrt[:, None] * d_inv_sqrt[None, :]


def reference_forward(a_hat, features, weights, biases):
    """Pure-JAX f32 reference for correctness checking."""
    h = features
    for w, b in zip(weights, biases):
        h = jnp.maximum(a_hat @ h @ w + b, 0.0)
    return jnp.mean(h, axis=0, keepdims=True)


# ----------------------------------- main -------------------------------------

if __name__ == "__main__":
    in_feats, n_hidden, n_classes, n_layers = 16, 32, 8, 2
    n_nodes = 64

    key = jax.random.PRNGKey(0)
    k_adj, k_feat, k_param = jax.random.split(key, 3)

    a_hat = normalized_adjacency(k_adj, n_nodes)
    features = jax.random.normal(k_feat, (n_nodes, in_feats), jnp.float32)
    weights, biases = init_params(k_param, in_feats, n_hidden, n_classes, n_layers)

    out = jax.jit(deep_dgl_gcn_forward)(a_hat, features, weights, biases)
    out = jax.block_until_ready(out)

    assert out.shape == (1, n_classes), out.shape
    assert jnp.all(jnp.isfinite(out))

    # bf16 MXU operands / bf16 inter-layer h, f32 accumulation => ~1% of f32 ref.
    ref = reference_forward(a_hat, features, weights, biases)
    assert jnp.allclose(out, ref, rtol=0.1, atol=0.05), (out, ref)

    print("KERNEL_OK")
</pallas_src>

<mosaic_0001>
module attributes {stable_mosaic.version = 11 : i64} {
  func.func @_agg_transform_kernel(%arg0: i32, %arg1: memref<128x128xbf16, #tpu.memory_space<vmem>>, %arg2: memref<128x128xbf16, #tpu.memory_space<vmem>>, %arg3: memref<128x128xbf16, #tpu.memory_space<vmem>>, %arg4: memref<1x128xf32, #tpu.memory_space<vmem>>, %arg5: memref<128x128xbf16, #tpu.memory_space<vmem>>) attributes {dimension_semantics = [#tpu.dimension_semantics<parallel>], iteration_bounds = array<i64: 1>, scalar_prefetch = 0 : i64, scratch_operands = 0 : i64, tpu.core_type = #tpu.core_type<tc>, window_params = [{transform_indices = @transform_0, window_bounds = array<i64: 128, 128>}, {pipeline_mode = #tpu.pipeline_mode<synchronous>, transform_indices = @transform_1, window_bounds = array<i64: 128, 128>}, {pipeline_mode = #tpu.pipeline_mode<synchronous>, transform_indices = @transform_2, window_bounds = array<i64: 128, 128>}, {pipeline_mode = #tpu.pipeline_mode<synchronous>, transform_indices = @transform_3, window_bounds = array<i64: 1, 128>}, {transform_indices = @transform_4, window_bounds = array<i64: 128, 128>}]} {
    %c0 = arith.constant 0 : index
    %c0_0 = arith.constant 0 : index
    %0 = vector.load %arg1[%c0, %c0_0] : memref<128x128xbf16, #tpu.memory_space<vmem>>, vector<128x128xbf16>
    %c0_1 = arith.constant 0 : index
    %c0_2 = arith.constant 0 : index
    %1 = vector.load %arg2[%c0_1, %c0_2] : memref<128x128xbf16, #tpu.memory_space<vmem>>, vector<128x128xbf16>
    %cst = arith.constant dense<0.000000e+00> : vector<128x128xf32>
    %2 = tpu.matmul %0, %1, %cst {dimension_numbers = #tpu.dot_dimension_numbers<[1], [0], [0], [1], [0, 0, 1, 1], [], []>} : vector<128x128xbf16>, vector<128x128xbf16>, vector<128x128xf32> -> vector<128x128xf32>
    %3 = arith.truncf %2 : vector<128x128xf32> to vector<128x128xbf16>
    %c0_3 = arith.constant 0 : index
    %c0_4 = arith.constant 0 : index
    %4 = vector.load %arg3[%c0_3, %c0_4] : memref<128x128xbf16, #tpu.memory_space<vmem>>, vector<128x128xbf16>
    %cst_5 = arith.constant dense<0.000000e+00> : vector<128x128xf32>
    %5 = tpu.matmul %3, %4, %cst_5 {dimension_numbers = #tpu.dot_dimension_numbers<[1], [0], [0], [1], [0, 0, 1, 1], [], []>} : vector<128x128xbf16>, vector<128x128xbf16>, vector<128x128xf32> -> vector<128x128xf32>
    %c0_6 = arith.constant 0 : index
    %c0_7 = arith.constant 0 : index
    %6 = vector.load %arg4[%c0_6, %c0_7] : memref<1x128xf32, #tpu.memory_space<vmem>>, vector<1x128xf32>
    %7 = vector.broadcast %6 : vector<1x128xf32> to vector<128x128xf32>
    %8 = arith.addf %5, %7 : vector<128x128xf32>
    %cst_8 = arith.constant 0.000000e+00 : f32
    %9 = vector.broadcast %cst_8 : f32 to vector<128x128xf32>
    %10 = arith.maximumf %8, %9 : vector<128x128xf32>
    %11 = arith.truncf %10 : vector<128x128xf32> to vector<128x128xbf16>
    %c0_9 = arith.constant 0 : index
    %c0_10 = arith.constant 0 : index
    %12 = vector.load %arg5[%c0_9, %c0_10] : memref<128x128xbf16, #tpu.memory_space<vmem>>, vector<128x128xbf16>
    tpu.vector_store %arg5[%c0_9, %c0_10], %11 {strides = array<i32>} : memref<128x128xbf16, #tpu.memory_space<vmem>>, vector<128x128xbf16>,
    return
  }
  func.func @transform_0(%arg0: i32) -> (i32, i32) {
    %c0_i32 = arith.constant 0 : i32
    %c0_i32_0 = arith.constant 0 : i32
    return %arg0, %c0_i32 : i32, i32
  }
  func.func @transform_1(%arg0: i32) -> (i32, i32) {
    %c0_i32 = arith.constant 0 : i32
    %c0_i32_0 = arith.constant 0 : i32
    %c0_i32_1 = arith.constant 0 : i32
    return %c0_i32, %c0_i32_0 : i32, i32
  }
  func.func @transform_2(%arg0: i32) -> (i32, i32) {
    %c0_i32 = arith.constant 0 : i32
    %c0_i32_0 = arith.constant 0 : i32
    %c0_i32_1 = arith.constant 0 : i32
    return %c0_i32, %c0_i32_0 : i32, i32
  }
  func.func @transform_3(%arg0: i32) -> (i32, i32) {
    %c0_i32 = arith.constant 0 : i32
    %c0_i32_0 = arith.constant 0 : i32
    %c0_i32_1 = arith.constant 0 : i32
    return %c0_i32, %c0_i32_0 : i32, i32
  }
  func.func @transform_4(%arg0: i32) -> (i32, i32) {
    %c0_i32 = arith.constant 0 : i32
    %c0_i32_0 = arith.constant 0 : i32
    return %arg0, %c0_i32 : i32, i32
  }
}

module attributes {stable_mosaic.version = 11 : i64} {
  func.func @_transform_kernel(%arg0: i32, %arg1: memref<128x128xbf16, #tpu.memory_space<vmem>>, %arg2: memref<128x128xbf16, #tpu.memory_space<vmem>>, %arg3: memref<128x128xbf16, #tpu.memory_space<vmem>>) attributes {dimension_semantics = [#tpu.dimension_semantics<parallel>], iteration_bounds = array<i64: 1>, scalar_prefetch = 0 : i64, scratch_operands = 0 : i64, tpu.core_type = #tpu.core_type<tc>, window_params = [{transform_indices = @transform_0, window_bounds = array<i64: 128, 128>}, {pipeline_mode = #tpu.pipeline_mode<synchronous>, transform_indices = @transform_1, window_bounds = array<i64: 128, 128>}, {transform_indices = @transform_2, window_bounds = array<i64: 128, 128>}]} {
    %c0 = arith.constant 0 : index
    %c0_0 = arith.constant 0 : index
    %0 = vector.load %arg1[%c0, %c0_0] : memref<128x128xbf16, #tpu.memory_space<vmem>>, vector<128x128xbf16>
    %c0_1 = arith.constant 0 : index
    %c0_2 = arith.constant 0 : index
    %1 = vector.load %arg2[%c0_1, %c0_2] : memref<128x128xbf16, #tpu.memory_space<vmem>>, vector<128x128xbf16>
    %cst = arith.constant dense<0.000000e+00> : vector<128x128xf32>
    %2 = tpu.matmul %0, %1, %cst {dimension_numbers = #tpu.dot_dimension_numbers<[1], [0], [0], [1], [0, 0, 1, 1], [], []>} : vector<128x128xbf16>, vector<128x128xbf16>, vector<128x128xf32> -> vector<128x128xf32>
    %3 = arith.truncf %2 : vector<128x128xf32> to vector<128x128xbf16>
    %c0_3 = arith.constant 0 : index
    %c0_4 = arith.constant 0 : index
    %4 = vector.load %arg3[%c0_3, %c0_4] : memref<128x128xbf16, #tpu.memory_space<vmem>>, vector<128x128xbf16>
    tpu.vector_store %arg3[%c0_3, %c0_4], %3 {strides = array<i32>} : memref<128x128xbf16, #tpu.memory_space<vmem>>, vector<128x128xbf16>,
    return
  }
  func.func @transform_0(%arg0: i32) -> (i32, i32) {
    %c0_i32 = arith.constant 0 : i32
    %c0_i32_0 = arith.constant 0 : i32
    return %arg0, %c0_i32 : i32, i32
  }
  func.func @transform_1(%arg0: i32) -> (i32, i32) {
    %c0_i32 = arith.constant 0 : i32
    %c0_i32_0 = arith.constant 0 : i32
    %c0_i32_1 = arith.constant 0 : i32
    return %c0_i32, %c0_i32_0 : i32, i32
  }
  func.func @transform_2(%arg0: i32) -> (i32, i32) {
    %c0_i32 = arith.constant 0 : i32
    %c0_i32_0 = arith.constant 0 : i32
    return %arg0, %c0_i32 : i32, i32
  }
}

module attributes {stable_mosaic.version = 11 : i64} {
  func.func @_agg_kernel(%arg0: i32, %arg1: memref<128x128xbf16, #tpu.memory_space<vmem>>, %arg2: memref<128x128xbf16, #tpu.memory_space<vmem>>, %arg3: memref<1x128xf32, #tpu.memory_space<vmem>>, %arg4: memref<128x128xbf16, #tpu.memory_space<vmem>>) attributes {dimension_semantics = [#tpu.dimension_semantics<parallel>], iteration_bounds = array<i64: 1>, scalar_prefetch = 0 : i64, scratch_operands = 0 : i64, tpu.core_type = #tpu.core_type<tc>, window_params = [{transform_indices = @transform_0, window_bounds = array<i64: 128, 128>}, {pipeline_mode = #tpu.pipeline_mode<synchronous>, transform_indices = @transform_1, window_bounds = array<i64: 128, 128>}, {pipeline_mode = #tpu.pipeline_mode<synchronous>, transform_indices = @transform_2, window_bounds = array<i64: 1, 128>}, {transform_indices = @transform_3, window_bounds = array<i64: 128, 128>}]} {
    %c0 = arith.constant 0 : index
    %c0_0 = arith.constant 0 : index
    %0 = vector.load %arg1[%c0, %c0_0] : memref<128x128xbf16, #tpu.memory_space<vmem>>, vector<128x128xbf16>
    %c0_1 = arith.constant 0 : index
    %c0_2 = arith.constant 0 : index
    %1 = vector.load %arg2[%c0_1, %c0_2] : memref<128x128xbf16, #tpu.memory_space<vmem>>, vector<128x128xbf16>
    %cst = arith.constant dense<0.000000e+00> : vector<128x128xf32>
    %2 = tpu.matmul %0, %1, %cst {dimension_numbers = #tpu.dot_dimension_numbers<[1], [0], [0], [1], [0, 0, 1, 1], [], []>} : vector<128x128xbf16>, vector<128x128xbf16>, vector<128x128xf32> -> vector<128x128xf32>
    %c0_3 = arith.constant 0 : index
    %c0_4 = arith.constant 0 : index
    %3 = vector.load %arg3[%c0_3, %c0_4] : memref<1x128xf32, #tpu.memory_space<vmem>>, vector<1x128xf32>
    %4 = vector.broadcast %3 : vector<1x128xf32> to vector<128x128xf32>
    %5 = arith.addf %2, %4 : vector<128x128xf32>
    %cst_5 = arith.constant 0.000000e+00 : f32
    %6 = vector.broadcast %cst_5 : f32 to vector<128x128xf32>
    %7 = arith.maximumf %5, %6 : vector<128x128xf32>
    %8 = arith.truncf %7 : vector<128x128xf32> to vector<128x128xbf16>
    %c0_6 = arith.constant 0 : index
    %c0_7 = arith.constant 0 : index
    %9 = vector.load %arg4[%c0_6, %c0_7] : memref<128x128xbf16, #tpu.memory_space<vmem>>, vector<128x128xbf16>
    tpu.vector_store %arg4[%c0_6, %c0_7], %8 {strides = array<i32>} : memref<128x128xbf16, #tpu.memory_space<vmem>>, vector<128x128xbf16>,
    return
  }
  func.func @transform_0(%arg0: i32) -> (i32, i32) {
    %c0_i32 = arith.constant 0 : i32
    %c0_i32_0 = arith.constant 0 : i32
    return %arg0, %c0_i32 : i32, i32
  }
  func.func @transform_1(%arg0: i32) -> (i32, i32) {
    %c0_i32 = arith.constant 0 : i32
    %c0_i32_0 = arith.constant 0 : i32
    %c0_i32_1 = arith.constant 0 : i32
    return %c0_i32, %c0_i32_0 : i32, i32
  }
  func.func @transform_2(%arg0: i32) -> (i32, i32) {
    %c0_i32 = arith.constant 0 : i32
    %c0_i32_0 = arith.constant 0 : i32
    %c0_i32_1 = arith.constant 0 : i32
    return %c0_i32, %c0_i32_0 : i32, i32
  }
  func.func @transform_3(%arg0: i32) -> (i32, i32) {
    %c0_i32 = arith.constant 0 : i32
    %c0_i32_0 = arith.constant 0 : i32
    return %arg0, %c0_i32 : i32, i32
  }
}

module attributes {stable_mosaic.version = 11 : i64} {
  func.func @_mean_kernel(%arg0: memref<128x128xbf16, #tpu.memory_space<vmem>>, %arg1: memref<1x128xf32, #tpu.memory_space<vmem>>) attributes {dimension_semantics = [], scalar_prefetch = 0 : i64, scratch_operands = 0 : i64, tpu.core_type = #tpu.core_type<tc>} {
    %c0 = arith.constant 0 : index
    %c0_0 = arith.constant 0 : index
    %0 = vector.load %arg0[%c0, %c0_0] : memref<128x128xbf16, #tpu.memory_space<vmem>>, vector<128x128xbf16>
    %1 = arith.extf %0 : vector<128x128xbf16> to vector<128x128xf32>
    %2 = tpu.iota {dimensions = array<i32: 0>} : vector<128x128xi32>
    %c64_i32 = arith.constant 64 : i32
    %3 = vector.broadcast %c64_i32 : i32 to vector<128x128xi32>
    %4 = arith.cmpi slt, %2, %3 : vector<128x128xi32>
    %cst = arith.constant 0.000000e+00 : f32
    %5 = vector.broadcast %cst : f32 to vector<128x128xf32>
    %6 = arith.select %4, %1, %5 : vector<128x128xi1>, vector<128x128xf32>
    %cst_1 = arith.constant dense<0.000000e+00> : vector<128xf32>
    %7 = vector.multi_reduction <add>, %6, %cst_1 [0] : vector<128x128xf32> to vector<128xf32>
    %8 = vector.shape_cast %7 : vector<128xf32> to vector<1x128xf32>
    %cst_2 = arith.constant 1.562500e-02 : f32
    %9 = vector.broadcast %cst_2 : f32 to vector<1x128xf32>
    %10 = arith.mulf %8, %9 : vector<1x128xf32>
    %c0_3 = arith.constant 0 : index
    %c0_4 = arith.constant 0 : index
    %11 = vector.load %arg1[%c0_3, %c0_4] : memref<1x128xf32, #tpu.memory_space<vmem>>, vector<1x128xf32>
    tpu.vector_store %arg1[%c0_3, %c0_4], %10 {strides = array<i32>} : memref<1x128xf32, #tpu.memory_space<vmem>>, vector<1x128xf32>,
    return
  }
}

</mosaic_0001>

<bundles_post_ra>
// kernel: deep_dgl_gcn_forward.9
= control target key start
LH: loop header
LB: loop body
LE: loop exit
PB: predicated region body
PF: predicated region fallthrough
CT: control target
= control target key end

     0   :  { %s195_s0 = inlined_call_operand.vmem [shape: bf16[128,128], index: 0, kind: input, shape index: {}]   ;;  %s196_s1 = inlined_call_operand.hbm [shape: f32[1,128], index: 1, kind: output, shape index: {}]  }
   0x1   :  { %v128_v0 = vld [vmem:[%s195_s0] sm:$0xff]   ;;  %v143_v1 = vld [vmem:[%s195_s0 + $0x8] sm:$0xff]  }
   0x2   :  { %v129_v2 = vunpack.c.l.bf16 %v128_v0  ;;  %v130_v3 = vunpack.c.h.bf16 %v128_v0  ;;  %v133_v4 = vunpack.c.l.bf16 %v143_v1 }
   0x3   :  { %6 = vsyncpa [#allocation3], 0  ;;  %v144_v5 = vld [vmem:[%s195_s0 + $0x10] sm:$0xff]   ;;  %v134_v6 = vunpack.c.h.bf16 %v143_v1  ;;  %v145_v10 = vld [vmem:[%s195_s0 + $0x18] sm:$0xff]   ;;  %s169_s14 = smov [#allocation2]  }
   0x4   :  { %v90_v7 = vadd.f32 %v130_v3, %v129_v2  ;;  %v137_v8 = vunpack.c.l.bf16 %v144_v5  ;;  %v138_v11 = vunpack.c.h.bf16 %v144_v5  ;;  %v141_v13 = vunpack.c.l.bf16 %v145_v10  ;;  %s119_s15 = sshll.u32 %s169_s14, 4  ;;  %s120_s15 = int_to_ptr.vmem [resolvable:$true] %s119_s15 }
   0x5   :  { %v142_v15 = vunpack.c.h.bf16 %v145_v10  ;;  %s147_s0 = scalar_lea.vmem %s120_s15, 16  ;;  %s151_s16 = scalar_lea.vmem %s120_s15, 32 }
   0x6   :  { %v91_v9 = vadd.f32 %v133_v4, %v90_v7  ;;  %p148_p0 = scmp.ne.s32.totalorder %s120_s15, %s147_s0  ;;  %p152_p1 = scmp.lt.s32.totalorder %s120_s15, %s120_s15 }
   0x7   :  { %p153_p2 = scmp.lt.s32.totalorder %s151_s16, %s147_s0 }
   0x8   :  { %v92_v12 = vadd.f32 %v134_v6, %v91_v9 }
   0x9   :  { %p154_p3 = por %p153_p2, %p152_p1 }
   0xa   :  { %v93_v14 = vadd.f32 %v137_v8, %v92_v12 }
   0xb   :  { %p155_p4 = pnand %p154_p3, %p148_p0 }
   0xc   :  { %v94_v16 = vadd.f32 %v138_v11, %v93_v14 }
   0xe   :  { %v95_v17 = vadd.f32 %v141_v13, %v94_v16 }
  0x10   :  { %v96_v18 = vadd.f32 %v142_v15, %v95_v17 }
  0x12   :  { %v105_v19 = vrot.slane %v96_v18, 4 }
  0x14   :  { %v106_v20 = vadd.f32 %v105_v19, %v96_v18 }
  0x16   :  { %v107_v21 = vrot.slane %v106_v20, 2 }
  0x18   :  { %v108_v22 = vadd.f32 %v107_v21, %v106_v20 }
  0x1a   :  { %v109_v23 = vrot.slane %v108_v22, 1 }
  0x1c   :  { %v110_v24 = vadd.f32 %v109_v23, %v108_v22 }
  0x1e   :  { %v111_v25 = vmul.f32 0.015625, %v110_v24 }
  0x20   :  { %112 = vst [vmem:[#allocation2] sm:$0x1] %v111_v25 }
  0x21   :  { %158 = shalt.err (!%p155_p4)
}
  0x22   :  { %122 = dma.vmem_to_hbm [thread:$0]  %s120_s15, 16, %s196_s1, [#allocation3]  }
  0x23   :  { %167 = dma.done.wait [#allocation3], 16  }
  0x24   :  { %168 = vsyncadd [#allocation3], 4294967280 }
  0x25   :  { %126 = vsyncpa [#allocation3], 1 }

// kernel: deep_dgl_gcn_forward.8
= control target key start
LH: loop header
LB: loop body
LE: loop exit
PB: predicated region body
PF: predicated region fallthrough
CT: control target
= control target key end

     0   :  { %s618_s1 = inlined_call_operand.vmem [shape: bf16[128,128], index: 1, kind: input, shape index: {}]   ;;  %s619_s0 = inlined_call_operand.vmem [shape: bf16[128,128], index: 0, kind: input, shape index: {}]   ;;  %s620_s2 = inlined_call_operand.vmem [shape: f32[1,128], index: 2, kind: input, shape index: {}]   ;;  %s621_s3 = inlined_call_operand.vmem [shape: bf16[128,128], index: 3, kind: output, shape index: {}]  }
   0x1   :  { %v507_v0 = vld [vmem:[%s618_s1 + $0x38] sm:$0xff]   ;;  %v508_v1 = vld [vmem:[%s618_s1 + $0x30] sm:$0xff]   ;;  %v509_v2 = vld [vmem:[%s618_s1 + $0x28] sm:$0xff]  }
   0x2   :  { %459 = vmatprep.subr.bf16.mxu0 %v507_v0  ;;  %491 = vmatprep.subr.bf16.mxu1 %v507_v0  ;;  %v510_v3 = vld [vmem:[%s618_s1 + $0x20] sm:$0xff]   ;;  %v511_v6 = vld [vmem:[%s618_s1 + $0x18] sm:$0xff]   ;;  %v512_v7 = vld [vmem:[%s618_s1 + $0x10] sm:$0xff]  }
   0x3   :  { %460 = vmatpush3.bf16.msra.mxu0 %v507_v0  ;;  %499 = vmatpush3.bf16.msra.mxu1 %v507_v0  ;;  %v515_v4 = vld [vmem:[%s619_s0] sm:$0xff]   ;;  %v513_v8 = vld [vmem:[%s618_s1 + $0x8] sm:$0xff]   ;;  %v519_v12 = vld [vmem:[%s619_s0 + $0x10] sm:$0xff]  }
   0x4   :  { %461 = vmatprep.subr.bf16.mxu0 %v508_v1  ;;  %492 = vmatprep.subr.bf16.mxu1 %v508_v1  ;;  %v516_v5 = vld [vmem:[%s619_s0 + $0x20] sm:$0xff]   ;;  %v517_v10 = vld [vmem:[%s619_s0 + $0x8] sm:$0xff]   ;;  %v520_v13 = vld [vmem:[%s619_s0 + $0x30] sm:$0xff]  }
   0x5   :  { %475 = vmatprep.mubr.bf16.mxu0 %v515_v4  ;;  %483 = vmatprep.mubr.bf16.mxu1 %v516_v5  ;;  %v514_v9 = vld [vmem:[%s618_s1] sm:$0xff]   ;;  %v518_v11 = vld [vmem:[%s619_s0 + $0x28] sm:$0xff]   ;;  %v521_v14 = vld [vmem:[%s619_s0 + $0x18] sm:$0xff]  }
   0x6   :  { %v522_v15 = vld [vmem:[%s619_s0 + $0x38] sm:$0xff]   ;;  %v347_v16 = vld [vmem:[%s620_s2] ss:$0 sm:$0xff] }
   0x7   :  { %462 = vmatpush3.bf16.msra.mxu0 %v508_v1  ;;  %500 = vmatpush3.bf16.msra.mxu1 %v508_v1 }
   0x8   :  { %463 = vmatprep.subr.bf16.mxu0 %v509_v2  ;;  %493 = vmatprep.subr.bf16.mxu1 %v509_v2 }
   0xb   :  { %464 = vmatpush3.bf16.msra.mxu0 %v509_v2  ;;  %501 = vmatpush3.bf16.msra.mxu1 %v509_v2 }
   0xc   :  { %465 = vmatprep.subr.bf16.mxu0 %v510_v3  ;;  %494 = vmatprep.subr.bf16.mxu1 %v510_v3 }
   0xf   :  { %466 = vmatpush3.bf16.msra.mxu0 %v510_v3  ;;  %502 = vmatpush3.bf16.msra.mxu1 %v510_v3 }
  0x10   :  { %467 = vmatprep.subr.bf16.mxu0 %v511_v6  ;;  %495 = vmatprep.subr.bf16.mxu1 %v511_v6 }
  0x13   :  { %468 = vmatpush3.bf16.msra.mxu0 %v511_v6  ;;  %503 = vmatpush3.bf16.msra.mxu1 %v511_v6 }
  0x14   :  { %469 = vmatprep.subr.bf16.mxu0 %v512_v7  ;;  %496 = vmatprep.subr.bf16.mxu1 %v512_v7 }
  0x17   :  { %470 = vmatpush3.bf16.msra.mxu0 %v512_v7  ;;  %504 = vmatpush3.bf16.msra.mxu1 %v512_v7 }
  0x18   :  { %471 = vmatprep.subr.bf16.mxu0 %v513_v8  ;;  %497 = vmatprep.subr.bf16.mxu1 %v513_v8 }
  0x1b   :  { %472 = vmatpush3.bf16.msra.mxu0 %v513_v8  ;;  %505 = vmatpush3.bf16.msra.mxu1 %v513_v8 }
  0x1c   :  { %473 = vmatprep.subr.bf16.mxu0 %v514_v9  ;;  %498 = vmatprep.subr.bf16.mxu1 %v514_v9 }
  0x1f   :  { %474 = vmatpush3.bf16.msra.mxu0 %v514_v9  ;;  %506 = vmatpush3.bf16.msra.mxu1 %v514_v9 }
  0x22   :  { %476 = vmatmul.mubr.bf16.vlgmr.msra.gmra.mxu0 %v517_v10  ;;  %484 = vmatmul.mubr.bf16.vlgmr.msra.gmra.mxu1 %v518_v11 }
  0x23   :  { %479 = vmatprep.mubr.bf16.mxu0 %v519_v12  ;;  %487 = vmatprep.mubr.bf16.mxu1 %v520_v13 }
  0x2a   :  { %480 = vmatmul.mubr.bf16.gmra.mxu0 %v521_v14  ;;  %488 = vmatmul.mubr.bf16.gmra.mxu1 %v522_v15 }
  0xe2   :  { %v477_v17 = vpop.f32.mrf.mxu0  ;;  %v485_v18 = vpop.f32.mrf.mxu1 }
  0xe3   :  { %v193_v19 = vadd.f32 %v477_v17, %v347_v16  ;;  %v225_v20 = vadd.f32 %v485_v18, %v347_v16 }
  0xe4   :  { %v184_v21 = vpop.f32.mrf.mxu0  ;;  %v216_v22 = vpop.f32.mrf.mxu1 }
  0xe5   :  { %v185_v23 = vadd.f32 %v347_v16, %v184_v21  ;;  %v217_v24 = vadd.f32 %v347_v16, %v216_v22  ;;  %v249_v29 = vmax.f32 %v193_v19, 0.0  ;;  %v257_v30 = vmax.f32 %v225_v20, 0.0 }
  0xe6   :  { %v478_v25 = vpop.f32.mrf.mxu0  ;;  %v486_v26 = vpop.f32.mrf.mxu1 }
  0xe7   :  { %v196_v27 = vadd.f32 %v478_v25, %v347_v16  ;;  %v228_v28 = vadd.f32 %v486_v26, %v347_v16  ;;  %v247_v37 = vmax.f32 %v185_v23, 0.0  ;;  %v255_v38 = vmax.f32 %v217_v24, 0.0 }
  0xe8   :  { %v187_v31 = vpop.f32.mrf.mxu0  ;;  %v219_v32 = vpop.f32.mrf.mxu1 }
  0xe9   :  { %v250_v33 = vmax.f32 %v196_v27, 0.0  ;;  %v258_v34 = vmax.f32 %v228_v28, 0.0  ;;  %v188_v35 = vadd.f32 %v347_v16, %v187_v31  ;;  %v220_v36 = vadd.f32 %v347_v16, %v219_v32 }
  0xea   :  { %v481_v39 = vpop.f32.mrf.mxu0  ;;  %v489_v40 = vpop.f32.mrf.mxu1 }
  0xeb   :  { %v404_v41 = vpack.c.bf16 %v250_v33, %v249_v29  ;;  %v424_v42 = vpack.c.bf16 %v258_v34, %v257_v30  ;;  %v248_v43 = vmax.f32 %v188_v35, 0.0  ;;  %v256_v44 = vmax.f32 %v220_v36, 0.0 }
  0xec   :  { %v209_v45 = vadd.f32 %v481_v39, %v347_v16  ;;  %v241_v46 = vadd.f32 %v489_v40, %v347_v16  ;;  %v200_v47 = vpop.f32.mrf.mxu0  ;;  %v232_v48 = vpop.f32.mrf.mxu1 }
  0xed   :  { %436 = vst [vmem:[%s621_s3 + $0x8] sm:$0xff] %v404_v41   ;;  %440 = vst [vmem:[%s621_s3 + $0x28] sm:$0xff] %v424_v42   ;;  %v399_v49 = vpack.c.bf16 %v248_v43, %v247_v37  ;;  %v419_v50 = vpack.c.bf16 %v256_v44, %v255_v38  ;;  %v201_v51 = vadd.f32 %v347_v16, %v200_v47 }
  0xee   :  { %v233_v52 = vadd.f32 %v347_v16, %v232_v48  ;;  %v482_v53 = vpop.f32.mrf.mxu0  ;;  %v490_v54 = vpop.f32.mrf.mxu1  ;;  %v253_v57 = vmax.f32 %v209_v45, 0.0  ;;  %v261_v58 = vmax.f32 %v241_v46, 0.0 }
  0xef   :  { %400 = vst [vmem:[%s621_s3] sm:$0xff] %v399_v49   ;;  %439 = vst [vmem:[%s621_s3 + $0x20] sm:$0xff] %v419_v50   ;;  %v212_v55 = vadd.f32 %v482_v53, %v347_v16  ;;  %v244_v56 = vadd.f32 %v490_v54, %v347_v16  ;;  %v251_v1 = vmax.f32 %v201_v51, 0.0 }
  0xf0   :  { %v203_v59 = vpop.f32.mrf.mxu0  ;;  %v235_v60 = vpop.f32.mrf.mxu1  ;;  %v259_v2 = vmax.f32 %v233_v52, 0.0 }
  0xf1   :  { %v254_v61 = vmax.f32 %v212_v55, 0.0  ;;  %v262_v62 = vmax.f32 %v244_v56, 0.0  ;;  %v204_v63 = vadd.f32 %v347_v16, %v203_v59  ;;  %v236_v0 = vadd.f32 %v347_v16, %v235_v60 }
  0xf3   :  { %v414_v3 = vpack.c.bf16 %v254_v61, %v253_v57  ;;  %v434_v4 = vpack.c.bf16 %v262_v62, %v261_v58  ;;  %v252_v5 = vmax.f32 %v204_v63, 0.0  ;;  %v260_v6 = vmax.f32 %v236_v0, 0.0 }
  0xf5   :  { %438 = vst [vmem:[%s621_s3 + $0x18] sm:$0xff] %v414_v3   ;;  %442 = vst [vmem:[%s621_s3 + $0x38] sm:$0xff] %v434_v4   ;;  %v409_v7 = vpack.c.bf16 %v252_v5, %v251_v1  ;;  %v429_v8 = vpack.c.bf16 %v260_v6, %v259_v2 }
  0xf7   :  { %437 = vst [vmem:[%s621_s3 + $0x10] sm:$0xff] %v409_v7   ;;  %441 = vst [vmem:[%s621_s3 + $0x30] sm:$0xff] %v429_v8  }

// kernel: deep_dgl_gcn_forward.5
= control target key start
LH: loop header
LB: loop body
LE: loop exit
PB: predicated region body
PF: predicated region fallthrough
CT: control target
= control target key end

     0   :  { %s867_s1 = inlined_call_operand.vmem [shape: bf16[128,128], index: 1, kind: input, shape index: {}]   ;;  %s868_s0 = inlined_call_operand.vmem [shape: bf16[128,128], index: 0, kind: input, shape index: {}]   ;;  %s869_s2 = inlined_call_operand.vmem [shape: bf16[128,128], index: 2, kind: input, shape index: {}]   ;;  %s870_s3 = inlined_call_operand.vmem [shape: f32[1,128], index: 3, kind: input, shape index: {}]   ;;  %s871_s4 = inlined_call_operand.vmem [shape: bf16[128,128], index: 4, kind: output, shape index: {}]  }
   0x1   :  { %v719_v0 = vld [vmem:[%s867_s1 + $0x38] sm:$0xff]   ;;  %v720_v1 = vld [vmem:[%s867_s1 + $0x30] sm:$0xff]   ;;  %v721_v2 = vld [vmem:[%s867_s1 + $0x28] sm:$0xff]  }
   0x2   :  { %655 = vmatprep.subr.bf16.mxu0 %v719_v0  ;;  %v722_v3 = vld [vmem:[%s867_s1 + $0x20] sm:$0xff]   ;;  %v723_v5 = vld [vmem:[%s867_s1 + $0x18] sm:$0xff]   ;;  %v724_v6 = vld [vmem:[%s867_s1 + $0x10] sm:$0xff]  }
   0x3   :  { %656 = vmatpush3.bf16.msra.mxu0 %v719_v0  ;;  %v727_v4 = vld [vmem:[%s868_s0] sm:$0xff]   ;;  %v735_v7 = vld [vmem:[%s869_s2 + $0x38] sm:$0xff]   ;;  %v736_v8 = vld [vmem:[%s869_s2 + $0x30] sm:$0xff]  }
   0x4   :  { %657 = vmatprep.subr.bf16.mxu0 %v720_v1  ;;  %671 = vmatprep.mubr.bf16.mxu0 %v727_v4  ;;  %v725_v9 = vld [vmem:[%s867_s1 + $0x8] sm:$0xff]   ;;  %v726_v11 = vld [vmem:[%s867_s1] sm:$0xff]   ;;  %v739_v13 = vld [vmem:[%s869_s2 + $0x18] sm:$0xff]  }
   0x5   :  { %687 = vmatprep.subr.bf16.mxu1 %v735_v7  ;;  %v737_v10 = vld [vmem:[%s869_s2 + $0x28] sm:$0xff]   ;;  %v738_v12 = vld [vmem:[%s869_s2 + $0x20] sm:$0xff]   ;;  %v729_v15 = vld [vmem:[%s868_s0 + $0x10] sm:$0xff]  }
   0x6   :  { %688 = vmatpush3.bf16.msra.mxu1 %v735_v7  ;;  %v728_v14 = vld [vmem:[%s868_s0 + $0x8] sm:$0xff]   ;;  %v740_v16 = vld [vmem:[%s869_s2 + $0x10] sm:$0xff]   ;;  %v730_v17 = vld [vmem:[%s868_s0 + $0x18] sm:$0xff]  }
   0x7   :  { %658 = vmatpush3.bf16.msra.mxu0 %v720_v1  ;;  %689 = vmatprep.subr.bf16.mxu1 %v736_v8  ;;  %v731_v18 = vld [vmem:[%s868_s0 + $0x20] sm:$0xff]   ;;  %v732_v19 = vld [vmem:[%s868_s0 + $0x28] sm:$0xff]   ;;  %v733_v20 = vld [vmem:[%s868_s0 + $0x30] sm:$0xff]  }
   0x8   :  { %659 = vmatprep.subr.bf16.mxu0 %v721_v2  ;;  %v734_v21 = vld [vmem:[%s868_s0 + $0x38] sm:$0xff]   ;;  %v741_v22 = vld [vmem:[%s869_s2 + $0x8] sm:$0xff]   ;;  %v742_v23 = vld [vmem:[%s869_s2] sm:$0xff]  }
   0x9   :  { %v535_v49 = vld [vmem:[%s870_s3] ss:$0 sm:$0xff] }
   0xa   :  { %690 = vmatpush3.bf16.msra.mxu1 %v736_v8 }
   0xb   :  { %660 = vmatpush3.bf16.msra.mxu0 %v721_v2  ;;  %691 = vmatprep.subr.bf16.mxu1 %v737_v10 }
   0xc   :  { %661 = vmatprep.subr.bf16.mxu0 %v722_v3 }
   0xe   :  { %692 = vmatpush3.bf16.msra.mxu1 %v737_v10 }
   0xf   :  { %662 = vmatpush3.bf16.msra.mxu0 %v722_v3  ;;  %693 = vmatprep.subr.bf16.mxu1 %v738_v12 }
  0x10   :  { %663 = vmatprep.subr.bf16.mxu0 %v723_v5 }
  0x12   :  { %694 = vmatpush3.bf16.msra.mxu1 %v738_v12 }
  0x13   :  { %664 = vmatpush3.bf16.msra.mxu0 %v723_v5  ;;  %695 = vmatprep.subr.bf16.mxu1 %v739_v13 }
  0x14   :  { %665 = vmatprep.subr.bf16.mxu0 %v724_v6 }
  0x16   :  { %696 = vmatpush3.bf16.msra.mxu1 %v739_v13 }
  0x17   :  { %666 = vmatpush3.bf16.msra.mxu0 %v724_v6  ;;  %697 = vmatprep.subr.bf16.mxu1 %v740_v16 }
  0x18   :  { %667 = vmatprep.subr.bf16.mxu0 %v725_v9 }
  0x1a   :  { %698 = vmatpush3.bf16.msra.mxu1 %v740_v16 }
  0x1b   :  { %668 = vmatpush3.bf16.msra.mxu0 %v725_v9  ;;  %699 = vmatprep.subr.bf16.mxu1 %v741_v22 }
  0x1c   :  { %669 = vmatprep.subr.bf16.mxu0 %v726_v11 }
  0x1e   :  { %700 = vmatpush3.bf16.msra.mxu1 %v741_v22 }
  0x1f   :  { %670 = vmatpush3.bf16.msra.mxu0 %v726_v11  ;;  %701 = vmatprep.subr.bf16.mxu1 %v742_v23 }
  0x22   :  { %672 = vmatmul.mubr.bf16.vlgmr.msra.gmra.mxu0 %v728_v14  ;;  %702 = vmatpush3.bf16.msra.mxu1 %v742_v23 }
  0x23   :  { %675 = vmatprep.mubr.bf16.mxu0 %v729_v15 }
  0x2a   :  { %676 = vmatmul.mubr.bf16.gmra.mxu0 %v730_v17 }
  0x2b   :  { %679 = vmatprep.mubr.bf16.mxu0 %v731_v18 }
  0x32   :  { %680 = vmatmul.mubr.bf16.gmra.mxu0 %v732_v19 }
  0x33   :  { %683 = vmatprep.mubr.bf16.mxu0 %v733_v20 }
  0x3a   :  { %684 = vmatmul.mubr.bf16.gmra.mxu0 %v734_v21 }
  0xe2   :  { %v673_v24 = vpop.f32.mrf.mxu0 }
  0xe4   :  { %v180_v25 = vpop.f32.mrf.mxu0 }
  0xe6   :  { %v674_v26 = vpop.f32.mrf.mxu0 }
  0xe7   :  { %v244_v29 = vpack.c.bf16 %v674_v26, %v673_v24 }
  0xe8   :  { %v183_v27 = vpop.f32.mrf.mxu0 }
  0xe9   :  { %v243_v28 = vpack.c.bf16 %v183_v27, %v180_v25 }
  0xea   :  { %v677_v30 = vpop.f32.mrf.mxu0 }
  0xeb   :  { %703 = vmatprep.mubr.bf16.mxu1 %v243_v28 }
  0xec   :  { %v196_v31 = vpop.f32.mrf.mxu0  ;;  %704 = vmatmul.mubr.bf16.vlgmr.msra.gmra.mxu1 %v244_v29 }
  0xee   :  { %v678_v32 = vpop.f32.mrf.mxu0 }
  0xef   :  { %v246_v35 = vpack.c.bf16 %v678_v32, %v677_v30 }
  0xf0   :  { %v199_v33 = vpop.f32.mrf.mxu0 }
  0xf1   :  { %v245_v34 = vpack.c.bf16 %v199_v33, %v196_v31 }
  0xf2   :  { %v681_v36 = vpop.f32.mrf.mxu0 }
  0xf3   :  { %707 = vmatprep.mubr.bf16.mxu1 %v245_v34 }
  0xf4   :  { %v212_v37 = vpop.f32.mrf.mxu0  ;;  %708 = vmatmul.mubr.bf16.gmra.mxu1 %v246_v35 }
  0xf6   :  { %v682_v38 = vpop.f32.mrf.mxu0 }
  0xf7   :  { %v248_v41 = vpack.c.bf16 %v682_v38, %v681_v36 }
  0xf8   :  { %v215_v39 = vpop.f32.mrf.mxu0 }
  0xf9   :  { %v247_v40 = vpack.c.bf16 %v215_v39, %v212_v37 }
  0xfa   :  { %v685_v42 = vpop.f32.mrf.mxu0 }
  0xfb   :  { %711 = vmatprep.mubr.bf16.mxu1 %v247_v40 }
  0xfc   :  { %v228_v43 = vpop.f32.mrf.mxu0  ;;  %712 = vmatmul.mubr.bf16.gmra.mxu1 %v248_v41 }
  0xfe   :  { %v686_v44 = vpop.f32.mrf.mxu0 }
  0xff   :  { %v250_v47 = vpack.c.bf16 %v686_v44, %v685_v42 }
 0x100   :  { %v231_v45 = vpop.f32.mrf.mxu0 }
 0x101   :  { %v249_v46 = vpack.c.bf16 %v231_v45, %v228_v43 }
 0x103   :  { %715 = vmatprep.mubr.bf16.mxu1 %v249_v46 }
 0x104   :  { %716 = vmatmul.mubr.bf16.gmra.mxu1 %v250_v47 }
 0x1ac   :  { %v705_v48 = vpop.f32.mrf.mxu1 }
 0x1ad   :  { %v365_v51 = vadd.f32 %v705_v48, %v535_v49 }
 0x1ae   :  { %v356_v50 = vpop.f32.mrf.mxu1 }
 0x1af   :  { %v357_v53 = vadd.f32 %v535_v49, %v356_v50  ;;  %v421_v56 = vmax.f32 %v365_v51, 0.0 }
 0x1b0   :  { %v706_v52 = vpop.f32.mrf.mxu1 }
 0x1b1   :  { %v368_v54 = vadd.f32 %v706_v52, %v535_v49  ;;  %v419_v60 = vmax.f32 %v357_v53, 0.0 }
 0x1b2   :  { %v359_v55 = vpop.f32.mrf.mxu1 }
 0x1b3   :  { %v422_v57 = vmax.f32 %v368_v54, 0.0  ;;  %v360_v58 = vadd.f32 %v535_v49, %v359_v55 }
 0x1b4   :  { %v709_v59 = vpop.f32.mrf.mxu1 }
 0x1b5   :  { %v584_v61 = vpack.c.bf16 %v422_v57, %v421_v56  ;;  %v420_v62 = vmax.f32 %v360_v58, 0.0  ;;  %v381_v1 = vadd.f32 %v709_v59, %v535_v49 }
 0x1b6   :  { %v372_v63 = vpop.f32.mrf.mxu1 }
 0x1b7   :  { %616 = vst [vmem:[%s871_s4 + $0x8] sm:$0xff] %v584_v61   ;;  %v579_v0 = vpack.c.bf16 %v420_v62, %v419_v60  ;;  %v373_v3 = vadd.f32 %v535_v49, %v372_v63  ;;  %v425_v6 = vmax.f32 %v381_v1, 0.0 }
 0x1b8   :  { %v710_v2 = vpop.f32.mrf.mxu1 }
 0x1b9   :  { %580 = vst [vmem:[%s871_s4] sm:$0xff] %v579_v0   ;;  %v384_v4 = vadd.f32 %v710_v2, %v535_v49  ;;  %v423_v10 = vmax.f32 %v373_v3, 0.0 }
 0x1ba   :  { %v375_v5 = vpop.f32.mrf.mxu1 }
 0x1bb   :  { %v426_v7 = vmax.f32 %v384_v4, 0.0  ;;  %v376_v8 = vadd.f32 %v535_v49, %v375_v5 }
 0x1bc   :  { %v713_v9 = vpop.f32.mrf.mxu1 }
 0x1bd   :  { %v594_v11 = vpack.c.bf16 %v426_v7, %v425_v6  ;;  %v424_v12 = vmax.f32 %v376_v8, 0.0  ;;  %v397_v15 = vadd.f32 %v713_v9, %v535_v49 }
 0x1be   :  { %v388_v13 = vpop.f32.mrf.mxu1 }
 0x1bf   :  { %618 = vst [vmem:[%s871_s4 + $0x18] sm:$0xff] %v594_v11   ;;  %v589_v14 = vpack.c.bf16 %v424_v12, %v423_v10  ;;  %v389_v17 = vadd.f32 %v535_v49, %v388_v13  ;;  %v429_v20 = vmax.f32 %v397_v15, 0.0 }
 0x1c0   :  { %v714_v16 = vpop.f32.mrf.mxu1 }
 0x1c1   :  { %617 = vst [vmem:[%s871_s4 + $0x10] sm:$0xff] %v589_v14   ;;  %v400_v18 = vadd.f32 %v714_v16, %v535_v49  ;;  %v427_v24 = vmax.f32 %v389_v17, 0.0 }
 0x1c2   :  { %v391_v19 = vpop.f32.mrf.mxu1 }
 0x1c3   :  { %v430_v21 = vmax.f32 %v400_v18, 0.0  ;;  %v392_v22 = vadd.f32 %v535_v49, %v391_v19 }
 0x1c4   :  { %v717_v23 = vpop.f32.mrf.mxu1 }
 0x1c5   :  { %v604_v25 = vpack.c.bf16 %v430_v21, %v429_v20  ;;  %v428_v26 = vmax.f32 %v392_v22, 0.0  ;;  %v413_v29 = vadd.f32 %v717_v23, %v535_v49 }
 0x1c6   :  { %v404_v27 = vpop.f32.mrf.mxu1 }
 0x1c7   :  { %620 = vst [vmem:[%s871_s4 + $0x28] sm:$0xff] %v604_v25   ;;  %v599_v28 = vpack.c.bf16 %v428_v26, %v427_v24  ;;  %v405_v31 = vadd.f32 %v535_v49, %v404_v27  ;;  %v433_v34 = vmax.f32 %v413_v29, 0.0 }
 0x1c8   :  { %v718_v30 = vpop.f32.mrf.mxu1 }
 0x1c9   :  { %619 = vst [vmem:[%s871_s4 + $0x20] sm:$0xff] %v599_v28   ;;  %v416_v32 = vadd.f32 %v718_v30, %v535_v49  ;;  %v431_v37 = vmax.f32 %v405_v31, 0.0 }
 0x1ca   :  { %v407_v33 = vpop.f32.mrf.mxu1 }
 0x1cb   :  { %v434_v35 = vmax.f32 %v416_v32, 0.0  ;;  %v408_v36 = vadd.f32 %v535_v49, %v407_v33 }
 0x1cd   :  { %v614_v38 = vpack.c.bf16 %v434_v35, %v433_v34  ;;  %v432_v39 = vmax.f32 %v408_v36, 0.0 }
 0x1cf   :  { %622 = vst [vmem:[%s871_s4 + $0x38] sm:$0xff] %v614_v38   ;;  %v609_v40 = vpack.c.bf16 %v432_v39, %v431_v37 }
 0x1d1   :  { %621 = vst [vmem:[%s871_s4 + $0x30] sm:$0xff] %v609_v40  }

// kernel: deep_dgl_gcn_forward.7
= control target key start
LH: loop header
LB: loop body
LE: loop exit
PB: predicated region body
PF: predicated region fallthrough
CT: control target
= control target key end

     0   :  { %s583_s1 = inlined_call_operand.vmem [shape: bf16[128,128], index: 1, kind: input, shape index: {}]   ;;  %s584_s0 = inlined_call_operand.vmem [shape: bf16[128,128], index: 0, kind: input, shape index: {}]   ;;  %s585_s2 = inlined_call_operand.vmem [shape: bf16[128,128], index: 2, kind: output, shape index: {}]  }
   0x1   :  { %v480_v0 = vld [vmem:[%s583_s1 + $0x38] sm:$0xff]   ;;  %v481_v1 = vld [vmem:[%s583_s1 + $0x30] sm:$0xff]   ;;  %v482_v2 = vld [vmem:[%s583_s1 + $0x28] sm:$0xff]  }
   0x2   :  { %432 = vmatprep.subr.bf16.mxu0 %v480_v0  ;;  %464 = vmatprep.subr.bf16.mxu1 %v480_v0  ;;  %v483_v3 = vld [vmem:[%s583_s1 + $0x20] sm:$0xff]   ;;  %v484_v6 = vld [vmem:[%s583_s1 + $0x18] sm:$0xff]   ;;  %v485_v7 = vld [vmem:[%s583_s1 + $0x10] sm:$0xff]  }
   0x3   :  { %433 = vmatpush3.bf16.msra.mxu0 %v480_v0  ;;  %472 = vmatpush3.bf16.msra.mxu1 %v480_v0  ;;  %v488_v4 = vld [vmem:[%s584_s0] sm:$0xff]   ;;  %v486_v8 = vld [vmem:[%s583_s1 + $0x8] sm:$0xff]   ;;  %v492_v12 = vld [vmem:[%s584_s0 + $0x10] sm:$0xff]  }
   0x4   :  { %434 = vmatprep.subr.bf16.mxu0 %v481_v1  ;;  %465 = vmatprep.subr.bf16.mxu1 %v481_v1  ;;  %v489_v5 = vld [vmem:[%s584_s0 + $0x20] sm:$0xff]   ;;  %v490_v10 = vld [vmem:[%s584_s0 + $0x8] sm:$0xff]   ;;  %v493_v13 = vld [vmem:[%s584_s0 + $0x30] sm:$0xff]  }
   0x5   :  { %448 = vmatprep.mubr.bf16.mxu0 %v488_v4  ;;  %456 = vmatprep.mubr.bf16.mxu1 %v489_v5  ;;  %v487_v9 = vld [vmem:[%s583_s1] sm:$0xff]   ;;  %v491_v11 = vld [vmem:[%s584_s0 + $0x28] sm:$0xff]   ;;  %v494_v14 = vld [vmem:[%s584_s0 + $0x18] sm:$0xff]  }
   0x6   :  { %v495_v15 = vld [vmem:[%s584_s0 + $0x38] sm:$0xff]  }
   0x7   :  { %435 = vmatpush3.bf16.msra.mxu0 %v481_v1  ;;  %473 = vmatpush3.bf16.msra.mxu1 %v481_v1 }
   0x8   :  { %436 = vmatprep.subr.bf16.mxu0 %v482_v2  ;;  %466 = vmatprep.subr.bf16.mxu1 %v482_v2 }
   0xb   :  { %437 = vmatpush3.bf16.msra.mxu0 %v482_v2  ;;  %474 = vmatpush3.bf16.msra.mxu1 %v482_v2 }
   0xc   :  { %438 = vmatprep.subr.bf16.mxu0 %v483_v3  ;;  %467 = vmatprep.subr.bf16.mxu1 %v483_v3 }
   0xf   :  { %439 = vmatpush3.bf16.msra.mxu0 %v483_v3  ;;  %475 = vmatpush3.bf16.msra.mxu1 %v483_v3 }
  0x10   :  { %440 = vmatprep.subr.bf16.mxu0 %v484_v6  ;;  %468 = vmatprep.subr.bf16.mxu1 %v484_v6 }
  0x13   :  { %441 = vmatpush3.bf16.msra.mxu0 %v484_v6  ;;  %476 = vmatpush3.bf16.msra.mxu1 %v484_v6 }
  0x14   :  { %442 = vmatprep.subr.bf16.mxu0 %v485_v7  ;;  %469 = vmatprep.subr.bf16.mxu1 %v485_v7 }
  0x17   :  { %443 = vmatpush3.bf16.msra.mxu0 %v485_v7  ;;  %477 = vmatpush3.bf16.msra.mxu1 %v485_v7 }
  0x18   :  { %444 = vmatprep.subr.bf16.mxu0 %v486_v8  ;;  %470 = vmatprep.subr.bf16.mxu1 %v486_v8 }
  0x1b   :  { %445 = vmatpush3.bf16.msra.mxu0 %v486_v8  ;;  %478 = vmatpush3.bf16.msra.mxu1 %v486_v8 }
  0x1c   :  { %446 = vmatprep.subr.bf16.mxu0 %v487_v9  ;;  %471 = vmatprep.subr.bf16.mxu1 %v487_v9 }
  0x1f   :  { %447 = vmatpush3.bf16.msra.mxu0 %v487_v9  ;;  %479 = vmatpush3.bf16.msra.mxu1 %v487_v9 }
  0x22   :  { %449 = vmatmul.mubr.bf16.vlgmr.msra.gmra.mxu0 %v490_v10  ;;  %457 = vmatmul.mubr.bf16.vlgmr.msra.gmra.mxu1 %v491_v11 }
  0x23   :  { %452 = vmatprep.mubr.bf16.mxu0 %v492_v12  ;;  %460 = vmatprep.mubr.bf16.mxu1 %v493_v13 }
  0x2a   :  { %453 = vmatmul.mubr.bf16.gmra.mxu0 %v494_v14  ;;  %461 = vmatmul.mubr.bf16.gmra.mxu1 %v495_v15 }
  0xe2   :  { %v450_v16 = vpop.f32.mrf.mxu0  ;;  %v458_v17 = vpop.f32.mrf.mxu1 }
  0xe4   :  { %v174_v18 = vpop.f32.mrf.mxu0  ;;  %v206_v19 = vpop.f32.mrf.mxu1 }
  0xe6   :  { %v451_v20 = vpop.f32.mrf.mxu0  ;;  %v459_v21 = vpop.f32.mrf.mxu1 }
  0xe7   :  { %v377_v22 = vpack.c.bf16 %v451_v20, %v450_v16  ;;  %v397_v23 = vpack.c.bf16 %v459_v21, %v458_v17 }
  0xe8   :  { %v177_v24 = vpop.f32.mrf.mxu0  ;;  %v209_v25 = vpop.f32.mrf.mxu1 }
  0xe9   :  { %409 = vst [vmem:[%s585_s2 + $0x8] sm:$0xff] %v377_v22   ;;  %413 = vst [vmem:[%s585_s2 + $0x28] sm:$0xff] %v397_v23   ;;  %v372_v26 = vpack.c.bf16 %v177_v24, %v174_v18  ;;  %v392_v27 = vpack.c.bf16 %v209_v25, %v206_v19 }
  0xea   :  { %v454_v28 = vpop.f32.mrf.mxu0  ;;  %v462_v29 = vpop.f32.mrf.mxu1 }
  0xeb   :  { %373 = vst [vmem:[%s585_s2] sm:$0xff] %v372_v26   ;;  %412 = vst [vmem:[%s585_s2 + $0x20] sm:$0xff] %v392_v27  }
  0xec   :  { %v190_v30 = vpop.f32.mrf.mxu0  ;;  %v222_v31 = vpop.f32.mrf.mxu1 }
  0xee   :  { %v455_v32 = vpop.f32.mrf.mxu0  ;;  %v463_v33 = vpop.f32.mrf.mxu1 }
  0xef   :  { %v387_v34 = vpack.c.bf16 %v455_v32, %v454_v28  ;;  %v407_v35 = vpack.c.bf16 %v463_v33, %v462_v29 }
  0xf0   :  { %v193_v36 = vpop.f32.mrf.mxu0  ;;  %v225_v37 = vpop.f32.mrf.mxu1 }
  0xf1   :  { %411 = vst [vmem:[%s585_s2 + $0x18] sm:$0xff] %v387_v34   ;;  %415 = vst [vmem:[%s585_s2 + $0x38] sm:$0xff] %v407_v35   ;;  %v382_v38 = vpack.c.bf16 %v193_v36, %v190_v30  ;;  %v402_v39 = vpack.c.bf16 %v225_v37, %v222_v31 }
  0xf3   :  { %410 = vst [vmem:[%s585_s2 + $0x10] sm:$0xff] %v382_v38   ;;  %414 = vst [vmem:[%s585_s2 + $0x30] sm:$0xff] %v402_v39  }

</bundles_post_ra>
